<compile_context>
chip_gen: v7x
topology: tpu7x:2x2x1
jax: 0.10.0
libtpu: 0.0.40
codegen_flags: <defaults>
</compile_context>

<pallas_src>
import functools

import jax
import jax.numpy as jnp
from jax.experimental import pallas as pl
from jax.experimental.pallas import tpu as pltpu


def _round_up(n: int, m: int) -> int:
    return ((n + m - 1) // m) * m


def _make_rnn_kernel(layer_dim: int, time_steps: int, batch_padded: int):
    """Builds a kernel closed over the static layer count, seq length, batch."""
    T, Bp = time_steps, batch_padded

    def kernel(x_ref, *refs):
        # refs layout (per layer): W_ih^T [Din_p,Hp], W_hh^T [Hp,Hp], bias [1,Hp]
        # then: W_fc^T [Hp,Op], b_fc [1,Op], output ref [Bp,Op].
        n_w = 3 * layer_dim + 2
        w_refs = refs[:n_w]
        out_ref = refs[n_w]

        Hp = w_refs[1].shape[0]

        seq = x_ref[...]                         # [T*Bp, Din_p] time-major slab
        h = jnp.zeros((Bp, Hp), jnp.float32)
        for l in range(layer_dim):
            # Hoisted, loop-invariant weight loads (once per layer).
            wih_t = w_refs[3 * l][...]           # [Din_p, Hp]
            whh_t = w_refs[3 * l + 1][...]       # [Hp, Hp]
            bias = w_refs[3 * l + 2][...]        # [1, Hp]  (b_ih + b_hh fused)

            # ONE batched MXU matmul for the whole sequence's input projection
            # (bias broadcast/add happens once per layer, not per step).
            ih = (
                jnp.dot(seq, wih_t, preferred_element_type=jnp.float32) + bias
            )                                    # [T*Bp, Hp]

            # Serial recurrence over time, fully unrolled (T static & small):
            # only h @ W_hh^T + ih[t] + relu remains on the critical path.
            # Each slice is exactly one (8,128) vreg thanks to padding.
            h = jnp.zeros((Bp, Hp), jnp.float32)
            h_list = []
            for t in range(T):
                pre = ih[t * Bp:(t + 1) * Bp, :] + jnp.dot(
                    h, whh_t, preferred_element_type=jnp.float32)
                h = jnp.maximum(pre, 0.0)        # nonlinearity='relu'
                if l + 1 < layer_dim:
                    h_list.append(h)
            if l + 1 < layer_dim:
                # Hidden sequence stays in vregs; one concat per layer replaces
                # T partial VMEM stores + a full reload.
                seq = jnp.concatenate(h_list, axis=0)   # [T*Bp, Hp]

        # Final Linear on the last timestep's hidden of the last layer.
        wfc_t = w_refs[3 * layer_dim][...]       # [Hp, Op]
        bfc = w_refs[3 * layer_dim + 1][...]     # [1, Op]
        out_ref[...] = (
            jnp.dot(h, wfc_t, preferred_element_type=jnp.float32) + bfc
        )

    return kernel


def prepare_params(params, *, input_dim, hidden_dim, layer_dim, output_dim):
    """One-time (out of the per-call path) transpose / bias-fuse / pad."""
    Hp = _round_up(hidden_dim, 128)
    Dp = _round_up(input_dim, 128)
    Op = _round_up(output_dim, 128)

    flat = []
    for l, (wih, whh, bih, bhh) in enumerate(params["layers"]):
        din = input_dim if l == 0 else hidden_dim
        din_p = Dp if l == 0 else Hp
        wih_t = (jnp.zeros((din_p, Hp), jnp.float32)
                 .at[:din, :hidden_dim].set(jnp.transpose(wih).astype(jnp.float32)))
        whh_t = (jnp.zeros((Hp, Hp), jnp.float32)
                 .at[:hidden_dim, :hidden_dim].set(jnp.transpose(whh).astype(jnp.float32)))
        bias = (jnp.zeros((1, Hp), jnp.float32)
                .at[0, :hidden_dim].set((bih + bhh).astype(jnp.float32)))
        flat += [wih_t, whh_t, bias]

    wfc_t = (jnp.zeros((Hp, Op), jnp.float32)
             .at[:hidden_dim, :output_dim].set(jnp.transpose(params["wfc"]).astype(jnp.float32)))
    bfc = (jnp.zeros((1, Op), jnp.float32)
           .at[0, :output_dim].set(params["bfc"].astype(jnp.float32)))
    flat += [wfc_t, bfc]
    return flat


def rnnimc_forward(x, flat_params, *, hidden_dim, layer_dim, output_dim):
    """x: [batch, time_step, input_dim] (PyTorch batch_first convention)."""
    B, T, D = x.shape
    Bp = _round_up(B, 8)
    Dp = _round_up(D, 128)
    Hp = _round_up(hidden_dim, 128)
    Op = _round_up(output_dim, 128)

    # Time-major, tile-padded slab [T*Bp, Dp] (row = t*Bp + b): the batched
    # input projection reads one contiguous 2-D operand and every per-timestep
    # slice in the recurrence is exactly one (8,128) vreg.
    x_tm = jnp.transpose(x, (1, 0, 2)).astype(jnp.float32)       # [T, B, D]
    x_tm = jnp.pad(x_tm, ((0, 0), (0, Bp - B), (0, Dp - D)))     # [T, Bp, Dp]
    x_tm = x_tm.reshape(T * Bp, Dp)

    kernel = _make_rnn_kernel(layer_dim, T, Bp)
    n_inputs = 1 + len(flat_params)

    # Grid-less call: the whole problem is a few hundred KB and latency-bound,
    # so it runs as a single VMEM-resident invocation on one TensorCore.
    # (On v7x with a large independent batch one would add a leading
    # "parallel" batch-chunk grid axis to shard across both TCs; pointless
    # at B=2.)
    out = pl.pallas_call(
        kernel,
        out_shape=jax.ShapeDtypeStruct((Bp, Op), jnp.float32),
        in_specs=[pl.BlockSpec(memory_space=pltpu.MemorySpace.VMEM)] * n_inputs,
        out_specs=pl.BlockSpec(memory_space=pltpu.MemorySpace.VMEM),
    )(x_tm, *flat_params)
    return out[:B, :output_dim]


def rnnimc_reference(x, params):
    """Pure-JAX reference mirroring nn.RNN(relu, batch_first) + Linear."""
    B, T, _ = x.shape
    inp = x
    for (wih, whh, bih, bhh) in params["layers"]:
        H = wih.shape[0]
        h = jnp.zeros((B, H), jnp.float32)
        outs = []
        for t in range(T):
            h = jnp.maximum(inp[:, t, :] @ wih.T + bih + h @ whh.T + bhh, 0.0)
            outs.append(h)
        inp = jnp.stack(outs, axis=1)
    last = inp[:, -1, :]
    return last @ params["wfc"].T + params["bfc"]


def init_params(key, input_dim, hidden_dim, layer_dim, output_dim):
    """Deterministic init, PyTorch-style U(-1/sqrt(H), 1/sqrt(H))."""
    k = 1.0 / jnp.sqrt(jnp.float32(hidden_dim))
    layers = []
    for l in range(layer_dim):
        din = input_dim if l == 0 else hidden_dim
        key, k1, k2, k3, k4 = jax.random.split(key, 5)
        layers.append((
            jax.random.uniform(k1, (hidden_dim, din), jnp.float32, -k, k),
            jax.random.uniform(k2, (hidden_dim, hidden_dim), jnp.float32, -k, k),
            jax.random.uniform(k3, (hidden_dim,), jnp.float32, -k, k),
            jax.random.uniform(k4, (hidden_dim,), jnp.float32, -k, k),
        ))
    kf = 1.0 / jnp.sqrt(jnp.float32(hidden_dim))
    key, k5, k6 = jax.random.split(key, 3)
    wfc = jax.random.uniform(k5, (output_dim, hidden_dim), jnp.float32, -kf, kf)
    bfc = jax.random.uniform(k6, (output_dim,), jnp.float32, -kf, kf)
    return {"layers": layers, "wfc": wfc, "bfc": bfc}


if __name__ == "__main__":
    # Small shapes consistent with the module's forward:
    #   x: [batch, time_step, input_dim]
    batch, time_step, input_dim = 2, 8, 16
    hidden_dim, layer_dim, output_dim = 32, 2, 10

    root = jax.random.PRNGKey(0)
    kx, kp = jax.random.split(root)
    x = jax.random.normal(kx, (batch, time_step, input_dim), jnp.float32)
    params = init_params(kp, input_dim, hidden_dim, layer_dim, output_dim)

    # One-time parameter preparation (transpose / fuse / pad) -- hoisted out
    # of the per-call path.
    flat_params = jax.block_until_ready(
        prepare_params(
            params,
            input_dim=input_dim,
            hidden_dim=hidden_dim,
            layer_dim=layer_dim,
            output_dim=output_dim,
        )
    )

    fwd = jax.jit(functools.partial(
        rnnimc_forward,
        hidden_dim=hidden_dim,
        layer_dim=layer_dim,
        output_dim=output_dim,
    ))
    out = jax.block_until_ready(fwd(x, flat_params))

    ref = rnnimc_reference(x, params)
    assert out.shape == (batch, output_dim)
    assert jnp.allclose(out, ref, atol=1e-4, rtol=1e-4)

    print("KERNEL_OK")
</pallas_src>

<mosaic_0001>
module attributes {stable_mosaic.version = 11 : i64} {
  func.func @kernel(%arg0: memref<64x128xf32, #tpu.memory_space<vmem>>, %arg1: memref<128x128xf32, #tpu.memory_space<vmem>>, %arg2: memref<128x128xf32, #tpu.memory_space<vmem>>, %arg3: memref<1x128xf32, #tpu.memory_space<vmem>>, %arg4: memref<128x128xf32, #tpu.memory_space<vmem>>, %arg5: memref<128x128xf32, #tpu.memory_space<vmem>>, %arg6: memref<1x128xf32, #tpu.memory_space<vmem>>, %arg7: memref<128x128xf32, #tpu.memory_space<vmem>>, %arg8: memref<1x128xf32, #tpu.memory_space<vmem>>, %arg9: memref<8x128xf32, #tpu.memory_space<vmem>>) attributes {dimension_semantics = [], scalar_prefetch = 0 : i64, scratch_operands = 0 : i64, tpu.core_type = #tpu.core_type<tc>} {
    %c0 = arith.constant 0 : index
    %c0_0 = arith.constant 0 : index
    %0 = vector.load %arg0[%c0, %c0_0] : memref<64x128xf32, #tpu.memory_space<vmem>>, vector<64x128xf32>
    %c0_1 = arith.constant 0 : index
    %c0_2 = arith.constant 0 : index
    %1 = vector.load %arg1[%c0_1, %c0_2] : memref<128x128xf32, #tpu.memory_space<vmem>>, vector<128x128xf32>
    %c0_3 = arith.constant 0 : index
    %c0_4 = arith.constant 0 : index
    %2 = vector.load %arg2[%c0_3, %c0_4] : memref<128x128xf32, #tpu.memory_space<vmem>>, vector<128x128xf32>
    %c0_5 = arith.constant 0 : index
    %c0_6 = arith.constant 0 : index
    %3 = vector.load %arg3[%c0_5, %c0_6] : memref<1x128xf32, #tpu.memory_space<vmem>>, vector<1x128xf32>
    %cst = arith.constant dense<0.000000e+00> : vector<64x128xf32>
    %4 = tpu.matmul %0, %1, %cst {dimension_numbers = #tpu.dot_dimension_numbers<[1], [0], [0], [1], [0, 0, 1, 1], [], []>} : vector<64x128xf32>, vector<128x128xf32>, vector<64x128xf32> -> vector<64x128xf32>
    %5 = vector.broadcast %3 : vector<1x128xf32> to vector<64x128xf32>
    %6 = arith.addf %4, %5 : vector<64x128xf32>
    %cst_7 = arith.constant 0.000000e+00 : f32
    %7 = vector.broadcast %cst_7 : f32 to vector<8x128xf32>
    %8 = vector.extract_strided_slice %6 {offsets = [0, 0], sizes = [8, 128], strides = [1, 1]} : vector<64x128xf32> to vector<8x128xf32>
    %cst_8 = arith.constant dense<0.000000e+00> : vector<8x128xf32>
    %9 = tpu.matmul %7, %2, %cst_8 {dimension_numbers = #tpu.dot_dimension_numbers<[1], [0], [0], [1], [0, 0, 1, 1], [], []>} : vector<8x128xf32>, vector<128x128xf32>, vector<8x128xf32> -> vector<8x128xf32>
    %10 = arith.addf %8, %9 : vector<8x128xf32>
    %cst_9 = arith.constant 0.000000e+00 : f32
    %11 = vector.broadcast %cst_9 : f32 to vector<8x128xf32>
    %12 = arith.maximumf %10, %11 : vector<8x128xf32>
    %13 = vector.extract_strided_slice %6 {offsets = [8, 0], sizes = [8, 128], strides = [1, 1]} : vector<64x128xf32> to vector<8x128xf32>
    %cst_10 = arith.constant dense<0.000000e+00> : vector<8x128xf32>
    %14 = tpu.matmul %12, %2, %cst_10 {dimension_numbers = #tpu.dot_dimension_numbers<[1], [0], [0], [1], [0, 0, 1, 1], [], []>} : vector<8x128xf32>, vector<128x128xf32>, vector<8x128xf32> -> vector<8x128xf32>
    %15 = arith.addf %13, %14 : vector<8x128xf32>
    %cst_11 = arith.constant 0.000000e+00 : f32
    %16 = vector.broadcast %cst_11 : f32 to vector<8x128xf32>
    %17 = arith.maximumf %15, %16 : vector<8x128xf32>
    %18 = vector.extract_strided_slice %6 {offsets = [16, 0], sizes = [8, 128], strides = [1, 1]} : vector<64x128xf32> to vector<8x128xf32>
    %cst_12 = arith.constant dense<0.000000e+00> : vector<8x128xf32>
    %19 = tpu.matmul %17, %2, %cst_12 {dimension_numbers = #tpu.dot_dimension_numbers<[1], [0], [0], [1], [0, 0, 1, 1], [], []>} : vector<8x128xf32>, vector<128x128xf32>, vector<8x128xf32> -> vector<8x128xf32>
    %20 = arith.addf %18, %19 : vector<8x128xf32>
    %cst_13 = arith.constant 0.000000e+00 : f32
    %21 = vector.broadcast %cst_13 : f32 to vector<8x128xf32>
    %22 = arith.maximumf %20, %21 : vector<8x128xf32>
    %23 = vector.extract_strided_slice %6 {offsets = [24, 0], sizes = [8, 128], strides = [1, 1]} : vector<64x128xf32> to vector<8x128xf32>
    %cst_14 = arith.constant dense<0.000000e+00> : vector<8x128xf32>
    %24 = tpu.matmul %22, %2, %cst_14 {dimension_numbers = #tpu.dot_dimension_numbers<[1], [0], [0], [1], [0, 0, 1, 1], [], []>} : vector<8x128xf32>, vector<128x128xf32>, vector<8x128xf32> -> vector<8x128xf32>
    %25 = arith.addf %23, %24 : vector<8x128xf32>
    %cst_15 = arith.constant 0.000000e+00 : f32
    %26 = vector.broadcast %cst_15 : f32 to vector<8x128xf32>
    %27 = arith.maximumf %25, %26 : vector<8x128xf32>
    %28 = vector.extract_strided_slice %6 {offsets = [32, 0], sizes = [8, 128], strides = [1, 1]} : vector<64x128xf32> to vector<8x128xf32>
    %cst_16 = arith.constant dense<0.000000e+00> : vector<8x128xf32>
    %29 = tpu.matmul %27, %2, %cst_16 {dimension_numbers = #tpu.dot_dimension_numbers<[1], [0], [0], [1], [0, 0, 1, 1], [], []>} : vector<8x128xf32>, vector<128x128xf32>, vector<8x128xf32> -> vector<8x128xf32>
    %30 = arith.addf %28, %29 : vector<8x128xf32>
    %cst_17 = arith.constant 0.000000e+00 : f32
    %31 = vector.broadcast %cst_17 : f32 to vector<8x128xf32>
    %32 = arith.maximumf %30, %31 : vector<8x128xf32>
    %33 = vector.extract_strided_slice %6 {offsets = [40, 0], sizes = [8, 128], strides = [1, 1]} : vector<64x128xf32> to vector<8x128xf32>
    %cst_18 = arith.constant dense<0.000000e+00> : vector<8x128xf32>
    %34 = tpu.matmul %32, %2, %cst_18 {dimension_numbers = #tpu.dot_dimension_numbers<[1], [0], [0], [1], [0, 0, 1, 1], [], []>} : vector<8x128xf32>, vector<128x128xf32>, vector<8x128xf32> -> vector<8x128xf32>
    %35 = arith.addf %33, %34 : vector<8x128xf32>
    %cst_19 = arith.constant 0.000000e+00 : f32
    %36 = vector.broadcast %cst_19 : f32 to vector<8x128xf32>
    %37 = arith.maximumf %35, %36 : vector<8x128xf32>
    %38 = vector.extract_strided_slice %6 {offsets = [48, 0], sizes = [8, 128], strides = [1, 1]} : vector<64x128xf32> to vector<8x128xf32>
    %cst_20 = arith.constant dense<0.000000e+00> : vector<8x128xf32>
    %39 = tpu.matmul %37, %2, %cst_20 {dimension_numbers = #tpu.dot_dimension_numbers<[1], [0], [0], [1], [0, 0, 1, 1], [], []>} : vector<8x128xf32>, vector<128x128xf32>, vector<8x128xf32> -> vector<8x128xf32>
    %40 = arith.addf %38, %39 : vector<8x128xf32>
    %cst_21 = arith.constant 0.000000e+00 : f32
    %41 = vector.broadcast %cst_21 : f32 to vector<8x128xf32>
    %42 = arith.maximumf %40, %41 : vector<8x128xf32>
    %43 = vector.extract_strided_slice %6 {offsets = [56, 0], sizes = [8, 128], strides = [1, 1]} : vector<64x128xf32> to vector<8x128xf32>
    %cst_22 = arith.constant dense<0.000000e+00> : vector<8x128xf32>
    %44 = tpu.matmul %42, %2, %cst_22 {dimension_numbers = #tpu.dot_dimension_numbers<[1], [0], [0], [1], [0, 0, 1, 1], [], []>} : vector<8x128xf32>, vector<128x128xf32>, vector<8x128xf32> -> vector<8x128xf32>
    %45 = arith.addf %43, %44 : vector<8x128xf32>
    %cst_23 = arith.constant 0.000000e+00 : f32
    %46 = vector.broadcast %cst_23 : f32 to vector<8x128xf32>
    %47 = arith.maximumf %45, %46 : vector<8x128xf32>
    %48 = tpu.concatenate %12, %17, %22, %27, %32, %37, %42, %47 in 0 : vector<8x128xf32>, vector<8x128xf32>, vector<8x128xf32>, vector<8x128xf32>, vector<8x128xf32>, vector<8x128xf32>, vector<8x128xf32>, vector<8x128xf32> -> vector<64x128xf32>
    %c0_24 = arith.constant 0 : index
    %c0_25 = arith.constant 0 : index
    %49 = vector.load %arg4[%c0_24, %c0_25] : memref<128x128xf32, #tpu.memory_space<vmem>>, vector<128x128xf32>
    %c0_26 = arith.constant 0 : index
    %c0_27 = arith.constant 0 : index
    %50 = vector.load %arg5[%c0_26, %c0_27] : memref<128x128xf32, #tpu.memory_space<vmem>>, vector<128x128xf32>
    %c0_28 = arith.constant 0 : index
    %c0_29 = arith.constant 0 : index
    %51 = vector.load %arg6[%c0_28, %c0_29] : memref<1x128xf32, #tpu.memory_space<vmem>>, vector<1x128xf32>
    %cst_30 = arith.constant dense<0.000000e+00> : vector<64x128xf32>
    %52 = tpu.matmul %48, %49, %cst_30 {dimension_numbers = #tpu.dot_dimension_numbers<[1], [0], [0], [1], [0, 0, 1, 1], [], []>} : vector<64x128xf32>, vector<128x128xf32>, vector<64x128xf32> -> vector<64x128xf32>
    %53 = vector.broadcast %51 : vector<1x128xf32> to vector<64x128xf32>
    %54 = arith.addf %52, %53 : vector<64x128xf32>
    %cst_31 = arith.constant 0.000000e+00 : f32
    %55 = vector.broadcast %cst_31 : f32 to vector<8x128xf32>
    %56 = vector.extract_strided_slice %54 {offsets = [0, 0], sizes = [8, 128], strides = [1, 1]} : vector<64x128xf32> to vector<8x128xf32>
    %cst_32 = arith.constant dense<0.000000e+00> : vector<8x128xf32>
    %57 = tpu.matmul %55, %50, %cst_32 {dimension_numbers = #tpu.dot_dimension_numbers<[1], [0], [0], [1], [0, 0, 1, 1], [], []>} : vector<8x128xf32>, vector<128x128xf32>, vector<8x128xf32> -> vector<8x128xf32>
    %58 = arith.addf %56, %57 : vector<8x128xf32>
    %cst_33 = arith.constant 0.000000e+00 : f32
    %59 = vector.broadcast %cst_33 : f32 to vector<8x128xf32>
    %60 = arith.maximumf %58, %59 : vector<8x128xf32>
    %61 = vector.extract_strided_slice %54 {offsets = [8, 0], sizes = [8, 128], strides = [1, 1]} : vector<64x128xf32> to vector<8x128xf32>
    %cst_34 = arith.constant dense<0.000000e+00> : vector<8x128xf32>
    %62 = tpu.matmul %60, %50, %cst_34 {dimension_numbers = #tpu.dot_dimension_numbers<[1], [0], [0], [1], [0, 0, 1, 1], [], []>} : vector<8x128xf32>, vector<128x128xf32>, vector<8x128xf32> -> vector<8x128xf32>
    %63 = arith.addf %61, %62 : vector<8x128xf32>
    %cst_35 = arith.constant 0.000000e+00 : f32
    %64 = vector.broadcast %cst_35 : f32 to vector<8x128xf32>
    %65 = arith.maximumf %63, %64 : vector<8x128xf32>
    %66 = vector.extract_strided_slice %54 {offsets = [16, 0], sizes = [8, 128], strides = [1, 1]} : vector<64x128xf32> to vector<8x128xf32>
    %cst_36 = arith.constant dense<0.000000e+00> : vector<8x128xf32>
    %67 = tpu.matmul %65, %50, %cst_36 {dimension_numbers = #tpu.dot_dimension_numbers<[1], [0], [0], [1], [0, 0, 1, 1], [], []>} : vector<8x128xf32>, vector<128x128xf32>, vector<8x128xf32> -> vector<8x128xf32>
    %68 = arith.addf %66, %67 : vector<8x128xf32>
    %cst_37 = arith.constant 0.000000e+00 : f32
    %69 = vector.broadcast %cst_37 : f32 to vector<8x128xf32>
    %70 = arith.maximumf %68, %69 : vector<8x128xf32>
    %71 = vector.extract_strided_slice %54 {offsets = [24, 0], sizes = [8, 128], strides = [1, 1]} : vector<64x128xf32> to vector<8x128xf32>
    %cst_38 = arith.constant dense<0.000000e+00> : vector<8x128xf32>
    %72 = tpu.matmul %70, %50, %cst_38 {dimension_numbers = #tpu.dot_dimension_numbers<[1], [0], [0], [1], [0, 0, 1, 1], [], []>} : vector<8x128xf32>, vector<128x128xf32>, vector<8x128xf32> -> vector<8x128xf32>
    %73 = arith.addf %71, %72 : vector<8x128xf32>
    %cst_39 = arith.constant 0.000000e+00 : f32
    %74 = vector.broadcast %cst_39 : f32 to vector<8x128xf32>
    %75 = arith.maximumf %73, %74 : vector<8x128xf32>
    %76 = vector.extract_strided_slice %54 {offsets = [32, 0], sizes = [8, 128], strides = [1, 1]} : vector<64x128xf32> to vector<8x128xf32>
    %cst_40 = arith.constant dense<0.000000e+00> : vector<8x128xf32>
    %77 = tpu.matmul %75, %50, %cst_40 {dimension_numbers = #tpu.dot_dimension_numbers<[1], [0], [0], [1], [0, 0, 1, 1], [], []>} : vector<8x128xf32>, vector<128x128xf32>, vector<8x128xf32> -> vector<8x128xf32>
    %78 = arith.addf %76, %77 : vector<8x128xf32>
    %cst_41 = arith.constant 0.000000e+00 : f32
    %79 = vector.broadcast %cst_41 : f32 to vector<8x128xf32>
    %80 = arith.maximumf %78, %79 : vector<8x128xf32>
    %81 = vector.extract_strided_slice %54 {offsets = [40, 0], sizes = [8, 128], strides = [1, 1]} : vector<64x128xf32> to vector<8x128xf32>
    %cst_42 = arith.constant dense<0.000000e+00> : vector<8x128xf32>
    %82 = tpu.matmul %80, %50, %cst_42 {dimension_numbers = #tpu.dot_dimension_numbers<[1], [0], [0], [1], [0, 0, 1, 1], [], []>} : vector<8x128xf32>, vector<128x128xf32>, vector<8x128xf32> -> vector<8x128xf32>
    %83 = arith.addf %81, %82 : vector<8x128xf32>
    %cst_43 = arith.constant 0.000000e+00 : f32
    %84 = vector.broadcast %cst_43 : f32 to vector<8x128xf32>
    %85 = arith.maximumf %83, %84 : vector<8x128xf32>
    %86 = vector.extract_strided_slice %54 {offsets = [48, 0], sizes = [8, 128], strides = [1, 1]} : vector<64x128xf32> to vector<8x128xf32>
    %cst_44 = arith.constant dense<0.000000e+00> : vector<8x128xf32>
    %87 = tpu.matmul %85, %50, %cst_44 {dimension_numbers = #tpu.dot_dimension_numbers<[1], [0], [0], [1], [0, 0, 1, 1], [], []>} : vector<8x128xf32>, vector<128x128xf32>, vector<8x128xf32> -> vector<8x128xf32>
    %88 = arith.addf %86, %87 : vector<8x128xf32>
    %cst_45 = arith.constant 0.000000e+00 : f32
    %89 = vector.broadcast %cst_45 : f32 to vector<8x128xf32>
    %90 = arith.maximumf %88, %89 : vector<8x128xf32>
    %91 = vector.extract_strided_slice %54 {offsets = [56, 0], sizes = [8, 128], strides = [1, 1]} : vector<64x128xf32> to vector<8x128xf32>
    %cst_46 = arith.constant dense<0.000000e+00> : vector<8x128xf32>
    %92 = tpu.matmul %90, %50, %cst_46 {dimension_numbers = #tpu.dot_dimension_numbers<[1], [0], [0], [1], [0, 0, 1, 1], [], []>} : vector<8x128xf32>, vector<128x128xf32>, vector<8x128xf32> -> vector<8x128xf32>
    %93 = arith.addf %91, %92 : vector<8x128xf32>
    %cst_47 = arith.constant 0.000000e+00 : f32
    %94 = vector.broadcast %cst_47 : f32 to vector<8x128xf32>
    %95 = arith.maximumf %93, %94 : vector<8x128xf32>
    %c0_48 = arith.constant 0 : index
    %c0_49 = arith.constant 0 : index
    %96 = vector.load %arg7[%c0_48, %c0_49] : memref<128x128xf32, #tpu.memory_space<vmem>>, vector<128x128xf32>
    %c0_50 = arith.constant 0 : index
    %c0_51 = arith.constant 0 : index
    %97 = vector.load %arg8[%c0_50, %c0_51] : memref<1x128xf32, #tpu.memory_space<vmem>>, vector<1x128xf32>
    %cst_52 = arith.constant dense<0.000000e+00> : vector<8x128xf32>
    %98 = tpu.matmul %95, %96, %cst_52 {dimension_numbers = #tpu.dot_dimension_numbers<[1], [0], [0], [1], [0, 0, 1, 1], [], []>} : vector<8x128xf32>, vector<128x128xf32>, vector<8x128xf32> -> vector<8x128xf32>
    %99 = vector.broadcast %97 : vector<1x128xf32> to vector<8x128xf32>
    %100 = arith.addf %98, %99 : vector<8x128xf32>
    %c0_53 = arith.constant 0 : index
    %c0_54 = arith.constant 0 : index
    %101 = vector.load %arg9[%c0_53, %c0_54] : memref<8x128xf32, #tpu.memory_space<vmem>>, vector<8x128xf32>
    tpu.vector_store %arg9[%c0_53, %c0_54], %100 {strides = array<i32>} : memref<8x128xf32, #tpu.memory_space<vmem>>, vector<8x128xf32>,
    return
  }
}

</mosaic_0001>

<bundles_post_ra>
// kernel: rnnimc_forward.1
= control target key start
LH: loop header
LB: loop body
LE: loop exit
PB: predicated region body
PF: predicated region fallthrough
CT: control target
= control target key end

     0   :  { %14 = vsyncpa [#allocation3], 0  ;;  %s3871_s0 = inlined_call_operand.vmem [shape: f32[64,128], index: 0, kind: input, shape index: {}]   ;;  %s3872_s1 = inlined_call_operand.hbm [shape: f32[128,128], index: 1, kind: input, shape index: {}]   ;;  %s3873_s2 = inlined_call_operand.hbm [shape: f32[128,128], index: 2, kind: input, shape index: {}]   ;;  %s3874_s3 = inlined_call_operand.vmem [shape: f32[1,128], index: 3, kind: input, shape index: {}]   ;;  %s3875_s4 = inlined_call_operand.vmem [shape: f32[128,128], index: 4, kind: input, shape index: {}]   ;;  %s3876_s5 = inlined_call_operand.hbm [shape: f32[128,128], index: 5, kind: input, shape index: {}]   ;;  %s3877_s6 = inlined_call_operand.vmem [shape: f32[1,128], index: 6, kind: input, shape index: {}]   ;;  %s3878_s7 = inlined_call_operand.hbm [shape: f32[128,128], index: 7, kind: input, shape index: {}]   ;;  %s3879_s8 = inlined_call_operand.vmem [shape: f32[1,128], index: 8, kind: input, shape index: {}]   ;;  %s3880_s9 = inlined_call_operand.vmem [shape: f32[8,128], index: 9, kind: output, shape index: {}]  }
   0x1   :  { %15 = vsyncpa [#allocation5], 0 }
   0x2   :  { %16 = vsyncpa [#allocation8], 0  ;;  %s3234_s30 = smov [#allocation4]   ;;  %s3235_s11 = smov [#allocation2]  }
   0x3   :  { %s36_s10 = sshll.u32 %s3234_s30, 4  ;;  %s24_s12 = sshll.u32 %s3235_s11, 4  ;;  %s37_s10 = int_to_ptr.vmem [resolvable:$true] %s36_s10  ;;  %s3293_s12 = int_to_ptr.vmem [resolvable:$true] %s24_s12 }
   0x4   :  { %s3140_s15 = scalar_lea.hbm %s3873_s2, 2048 }
   0x5   :  { %p3141_p0 = scmp.ne.s32.totalorder %s3873_s2, %s3140_s15  ;;  %p3144_p1 = scmp.lt.u32.totalorder %s3140_s15, %s3873_s2 }
   0x7   :  { %p3146_p2 = pnand %p3144_p1, %p3141_p0 }
   0x9   :  { %3149 = shalt.err (!%p3146_p2)
}
   0xa   :  { %s3150_s20 = scalar_lea.vmem %s37_s10, 2048  ;;  %p3155_p4 = scmp.lt.s32.totalorder %s37_s10, %s37_s10 }
   0xb   :  { %p3151_p3 = scmp.ne.s32.totalorder %s37_s10, %s3150_s20  ;;  %p3156_p5 = scmp.lt.s32.totalorder %s3150_s20, %s3150_s20 }
   0xd   :  { %p3157_p6 = por %p3156_p5, %p3155_p4 }
   0xf   :  { %p3158_p7 = pnand %p3157_p6, %p3151_p3 }
  0x11   :  { %3161 = shalt.err (!%p3158_p7)
}
  0x12   :  { %s3236_s21 = smov 128   ;;  %s3237_s22 = smov 8  }
  0x13   :  { %42 = dma.hbm_to_vmem [thread:$0]  %s3873_s2, 2048, %s37_s10, [#allocation5], %s3236_s21, %s3236_s21, %s3237_s22  }
  0x14   :  { %s3162_s27 = scalar_lea.hbm %s3872_s1, 2048 }
  0x15   :  { %p3163_p8 = scmp.ne.s32.totalorder %s3872_s1, %s3162_s27  ;;  %p3166_p9 = scmp.lt.u32.totalorder %s3162_s27, %s3872_s1 }
  0x17   :  { %p3168_p10 = pnand %p3166_p9, %p3163_p8 }
  0x19   :  { %3171 = shalt.err (!%p3168_p10)
}
  0x1a   :  { %s3172_s13 = scalar_lea.vmem %s3293_s12, 2048  ;;  %p3177_p12 = scmp.lt.s32.totalorder %s3293_s12, %s3293_s12 }
  0x1b   :  { %p3173_p11 = scmp.ne.s32.totalorder %s3293_s12, %s3172_s13  ;;  %p3178_p13 = scmp.lt.s32.totalorder %s3172_s13, %s3172_s13 }
  0x1d   :  { %p3179_p0 = por %p3178_p13, %p3177_p12 }
  0x1f   :  { %p3180_p1 = pnand %p3179_p0, %p3173_p11 }
  0x21   :  { %3183 = shalt.err (!%p3180_p1)
}
  0x22   :  { %30 = dma.hbm_to_vmem [thread:$0]  %s3872_s1, 2048, %s3293_s12, [#allocation3], %s3236_s21, %s3236_s21, %s3237_s22  }
  0x23   :  { %s3238_s14 = smov [#allocation6]   ;;  %s3239_s16 = smov [#allocation7]  }
  0x24   :  { %s52_s15 = sshll.u32 %s3238_s14, 4  ;;  %s66_s17 = sshll.u32 %s3239_s16, 4  ;;  %s53_s15 = int_to_ptr.vmem [resolvable:$true] %s52_s15  ;;  %s3330_s17 = int_to_ptr.vmem [resolvable:$true] %s66_s17 }
  0x25   :  { %s3184_s20 = scalar_lea.hbm %s3876_s5, 2048 }
  0x26   :  { %p3185_p2 = scmp.ne.s32.totalorder %s3876_s5, %s3184_s20  ;;  %p3188_p3 = scmp.lt.u32.totalorder %s3184_s20, %s3876_s5 }
  0x28   :  { %p3190_p4 = pnand %p3188_p3, %p3185_p2 }
  0x2a   :  { %3193 = shalt.err (!%p3190_p4)
}
  0x2b   :  { %s3194_s1 = scalar_lea.vmem %s53_s15, 2048  ;;  %p3199_p6 = scmp.lt.s32.totalorder %s53_s15, %s53_s15 }
  0x2c   :  { %p3195_p5 = scmp.ne.s32.totalorder %s53_s15, %s3194_s1  ;;  %p3200_p7 = scmp.lt.s32.totalorder %s3194_s1, %s3194_s1 }
  0x2e   :  { %p3201_p8 = por %p3200_p7, %p3199_p6 }
  0x30   :  { %p3202_p9 = pnand %p3201_p8, %p3195_p5 }
  0x32   :  { %3205 = shalt.err (!%p3202_p9)
}
  0x33   :  { %58 = dma.hbm_to_vmem [thread:$0]  %s3876_s5, 2048, %s53_s15, [#allocation5], %s3236_s21, %s3236_s21, %s3237_s22  }
  0x34   :  { %s3206_s30 = scalar_lea.hbm %s3878_s7, 2048 }
  0x35   :  { %p3207_p10 = scmp.ne.s32.totalorder %s3878_s7, %s3206_s30  ;;  %p3210_p11 = scmp.lt.u32.totalorder %s3206_s30, %s3878_s7 }
  0x37   :  { %p3212_p12 = pnand %p3210_p11, %p3207_p10 }
  0x39   :  { %3215 = shalt.err (!%p3212_p12)
}
  0x3a   :  { %s3216_s14 = scalar_lea.vmem %s3330_s17, 2048  ;;  %p3221_p0 = scmp.lt.s32.totalorder %s3330_s17, %s3330_s17 }
  0x3b   :  { %p3217_p13 = scmp.ne.s32.totalorder %s3330_s17, %s3216_s14  ;;  %p3222_p1 = scmp.lt.s32.totalorder %s3216_s14, %s3216_s14 }
  0x3d   :  { %p3223_p2 = por %p3222_p1, %p3221_p0 }
  0x3f   :  { %p3224_p3 = pnand %p3223_p2, %p3217_p13 }
  0x41   :  { %3227 = shalt.err (!%p3224_p3)
}
  0x42   :  { %72 = dma.hbm_to_vmem [thread:$0]  %s3878_s7, 2048, %s3330_s17, [#allocation8], %s3236_s21, %s3236_s21, %s3237_s22  }
  0x43   :  { %3228 = dma.done.wait [#allocation3], 2048  }
  0x44   :  { %3229 = vsyncadd [#allocation3], 4294965248 }
  0x45   :  { %3230 = dma.done.wait [#allocation5], 4096  }
  0x46   :  { %3231 = vsyncadd [#allocation5], 4294963200 }
  0x47   :  { %3232 = dma.done.wait [#allocation8], 2048  }
  0x48   :  { %3233 = vsyncadd [#allocation8], 4294965248  ;;  %v3240_v0 = vmov 0.0|0.0   ;;  %vm3241_vm0 = vmmov 0   ;;  %v3242_v1 = vmov 0.0   ;;  %v95_v2 = vld [vmem:[#allocation2] sm:$0xff] }
  0x49   :  { %2691 = vmatprep.subr.bf16.mxu1 %v3240_v0  ;;  %2052 = vmatprep.mubr.msk.f32.mxu1 %vm3241_vm0, %v3242_v1  ;;  %v96_v3 = vld [vmem:[#allocation2 + $0x8] sm:$0xff]  ;;  %v111_v4 = vld [vmem:[#allocation4] sm:$0xff]  ;;  %v97_v7 = vld [vmem:[#allocation2 + $0x10] sm:$0xff] }
  0x4a   :  { %v2659_v5 = vpack.c.bf16 %v96_v3, %v95_v2  ;;  %v112_v6 = vld [vmem:[#allocation4 + $0x8] sm:$0xff]  ;;  %v98_v8 = vld [vmem:[#allocation2 + $0x18] sm:$0xff]  ;;  %v113_v11 = vld [vmem:[#allocation4 + $0x10] sm:$0xff] }
  0x4b   :  { %v3370_v9 = vpack.c.bf16 %v112_v6, %v111_v4  ;;  %v2663_v10 = vpack.c.bf16 %v98_v8, %v97_v7  ;;  %v114_v12 = vld [vmem:[#allocation4 + $0x18] sm:$0xff]  ;;  %v99_v13 = vld [vmem:[#allocation2 + $0x20] sm:$0xff]  ;;  %v100_v14 = vld [vmem:[#allocation2 + $0x28] sm:$0xff] }
  0x4c   :  { %2660 = vmatprep.subr.bf16.mxu0 %v2659_v5  ;;  %v3373_v15 = vpack.c.bf16 %v114_v12, %v113_v11  ;;  %v2667_v16 = vpack.c.bf16 %v100_v14, %v99_v13  ;;  %v115_v17 = vld [vmem:[#allocation4 + $0x20] sm:$0xff]  ;;  %v116_v18 = vld [vmem:[#allocation4 + $0x28] sm:$0xff]  ;;  %v101_v19 = vld [vmem:[#allocation2 + $0x30] sm:$0xff] }
  0x4d   :  { %2662 = vmatpush3.bf16.msra.mxu0 %v2659_v5  ;;  %2693 = vmatpush3.bf16.msra.mxu1 %v3370_v9  ;;  %v102_v20 = vld [vmem:[#allocation2 + $0x38] sm:$0xff]  ;;  %v3377_v21 = vpack.c.bf16 %v116_v18, %v115_v17  ;;  %v117_v23 = vld [vmem:[#allocation4 + $0x30] sm:$0xff]  ;;  %v103_v25 = vld [vmem:[#allocation2 + $0x40] sm:$0xff] }
  0x4e   :  { %2664 = vmatprep.subr.bf16.mxu0 %v2663_v10  ;;  %2694 = vmatprep.subr.bf16.mxu1 %v3240_v0  ;;  %v2671_v22 = vpack.c.bf16 %v102_v20, %v101_v19  ;;  %v118_v24 = vld [vmem:[#allocation4 + $0x38] sm:$0xff]  ;;  %v104_v26 = vld [vmem:[#allocation2 + $0x48] sm:$0xff]  ;;  %v87_v27 = vld [vmem:[%s3871_s0] sm:$0xff] }
  0x4f   :  { %2008 = vmatprep.mubr.f32.mxu0 %v87_v27  ;;  %v3384_v28 = vpack.c.bf16 %v118_v24, %v117_v23  ;;  %v2675_v29 = vpack.c.bf16 %v104_v26, %v103_v25  ;;  %v119_v30 = vld [vmem:[#allocation4 + $0x40] sm:$0xff]  ;;  %v120_v31 = vld [vmem:[#allocation4 + $0x48] sm:$0xff]  ;;  %v105_v32 = vld [vmem:[#allocation2 + $0x50] sm:$0xff] }
  0x50   :  { %v106_v33 = vld [vmem:[#allocation2 + $0x58] sm:$0xff]  ;;  %v3388_v34 = vpack.c.bf16 %v120_v31, %v119_v30  ;;  %v121_v36 = vld [vmem:[#allocation4 + $0x50] sm:$0xff]  ;;  %v107_v38 = vld [vmem:[#allocation2 + $0x60] sm:$0xff] }
  0x51   :  { %2666 = vmatpush3.bf16.msra.mxu0 %v2663_v10  ;;  %2696 = vmatpush3.bf16.msra.mxu1 %v3373_v15  ;;  %v2679_v35 = vpack.c.bf16 %v106_v33, %v105_v32  ;;  %v122_v37 = vld [vmem:[#allocation4 + $0x58] sm:$0xff]  ;;  %v108_v39 = vld [vmem:[#allocation2 + $0x68] sm:$0xff]  ;;  %v123_v42 = vld [vmem:[#allocation4 + $0x60] sm:$0xff] }
  0x52   :  { %2668 = vmatprep.subr.bf16.mxu0 %v2667_v16  ;;  %2697 = vmatprep.subr.bf16.mxu1 %v3240_v0  ;;  %v3392_v40 = vpack.c.bf16 %v122_v37, %v121_v36  ;;  %v2683_v41 = vpack.c.bf16 %v108_v39, %v107_v38  ;;  %v124_v43 = vld [vmem:[#allocation4 + $0x68] sm:$0xff]  ;;  %v109_v44 = vld [vmem:[#allocation2 + $0x70] sm:$0xff]  ;;  %v110_v45 = vld [vmem:[#allocation2 + $0x78] sm:$0xff] }
  0x53   :  { %v3396_v46 = vpack.c.bf16 %v124_v43, %v123_v42  ;;  %v2687_v47 = vpack.c.bf16 %v110_v45, %v109_v44  ;;  %v125_v48 = vld [vmem:[#allocation4 + $0x70] sm:$0xff]  ;;  %v126_v49 = vld [vmem:[#allocation4 + $0x78] sm:$0xff]  ;;  %v88_v51 = vld [vmem:[%s3871_s0 + $0x8] sm:$0xff] }
  0x54   :  { %v3400_v50 = vpack.c.bf16 %v126_v49, %v125_v48  ;;  %v89_v52 = vld [vmem:[%s3871_s0 + $0x10] sm:$0xff]  ;;  %v90_v53 = vld [vmem:[%s3871_s0 + $0x18] sm:$0xff]  ;;  %v91_v54 = vld [vmem:[%s3871_s0 + $0x20] sm:$0xff] }
  0x55   :  { %2670 = vmatpush3.bf16.msra.mxu0 %v2667_v16  ;;  %2699 = vmatpush3.bf16.msra.mxu1 %v3377_v21  ;;  %v92_v55 = vld [vmem:[%s3871_s0 + $0x28] sm:$0xff]  ;;  %v93_v56 = vld [vmem:[%s3871_s0 + $0x30] sm:$0xff]  ;;  %v94_v57 = vld [vmem:[%s3871_s0 + $0x38] sm:$0xff] }
  0x56   :  { %2672 = vmatprep.subr.bf16.mxu0 %v2671_v22  ;;  %2700 = vmatprep.subr.bf16.mxu1 %v3240_v0  ;;  %v3467_v58 = vld [vmem:[%s3874_s3] ss:$0 sm:$0xff]  ;;  %v818_v36 = vld [vmem:[%s3875_s4 + $0x18] sm:$0xff]  ;;  %v820_v42 = vld [vmem:[%s3875_s4 + $0x28] sm:$0xff] }
  0x57   :  { %v821_v44 = vld [vmem:[%s3875_s4 + $0x30] sm:$0xff]  ;;  %v822_v45 = vld [vmem:[%s3875_s4 + $0x38] sm:$0xff]  ;;  %v824_v48 = vld [vmem:[%s3875_s4 + $0x48] sm:$0xff] }
  0x59   :  { %2674 = vmatpush3.bf16.msra.mxu0 %v2671_v22  ;;  %2702 = vmatpush3.bf16.msra.mxu1 %v3384_v28 }
  0x5a   :  { %2676 = vmatprep.subr.bf16.mxu0 %v2675_v29  ;;  %2703 = vmatprep.subr.bf16.mxu1 %v3240_v0 }
  0x5d   :  { %2678 = vmatpush3.bf16.msra.mxu0 %v2675_v29  ;;  %2705 = vmatpush3.bf16.msra.mxu1 %v3388_v34 }
  0x5e   :  { %2680 = vmatprep.subr.bf16.mxu0 %v2679_v35  ;;  %2706 = vmatprep.subr.bf16.mxu1 %v3240_v0 }
  0x61   :  { %2682 = vmatpush3.bf16.msra.mxu0 %v2679_v35  ;;  %2708 = vmatpush3.bf16.msra.mxu1 %v3392_v40  ;;  %v817_v35 = vld [vmem:[%s3875_s4 + $0x10] sm:$0xff] }
  0x62   :  { %2684 = vmatprep.subr.bf16.mxu0 %v2683_v41  ;;  %2709 = vmatprep.subr.bf16.mxu1 %v3240_v0 }
  0x65   :  { %2686 = vmatpush3.bf16.msra.mxu0 %v2683_v41  ;;  %2711 = vmatpush3.bf16.msra.mxu1 %v3396_v46  ;;  %v819_v41 = vld [vmem:[%s3875_s4 + $0x20] sm:$0xff] }
  0x66   :  { %2688 = vmatprep.subr.bf16.mxu0 %v2687_v47  ;;  %2712 = vmatprep.subr.bf16.mxu1 %v3240_v0  ;;  %v2891_v43 = vpack.c.bf16 %v820_v42, %v819_v41 }
  0x69   :  { %2690 = vmatpush3.bf16.msra.mxu0 %v2687_v47  ;;  %2714 = vmatpush3.bf16.msra.mxu1 %v3400_v50  ;;  %v823_v47 = vld [vmem:[%s3875_s4 + $0x40] sm:$0xff] }
  0x6a   :  { %2715 = vmatprep.subr.bf16.mxu0 %v3240_v0  ;;  %2739 = vmatprep.subr.bf16.mxu1 %v3240_v0  ;;  %v2899_v49 = vpack.c.bf16 %v824_v48, %v823_v47 }
  0x6c   :  { %2009 = vmatmul.mubr.f32.vlgmr.msra.gmra.mrb[0].mxu0 %v88_v51  ;;  %2053 = vmatmul.mubr.f32.vlgmr.msra.gmra.mrb[0].mxu1 %v3242_v1  ;;  %v826_v51 = vld [vmem:[%s3875_s4 + $0x58] sm:$0xff] }
  0x6d   :  { %2717 = vmatpush3.bf16.msra.mxu0 %v3370_v9  ;;  %2011 = vmatprep.mubr.f32.mxu0 %v89_v52 }
  0x6e   :  { %2718 = vmatprep.subr.bf16.mxu0 %v3240_v0  ;;  %2741 = vmatpush3.bf16.msra.mxu1 %v3370_v9 }
  0x6f   :  { %2742 = vmatprep.subr.bf16.mxu1 %v3240_v0  ;;  %2122 = vmatprep.mubr.msk.f32.mxu1 %vm3241_vm0, %v3242_v1 }
  0x70   :  { %2012 = vmatmul.mubr.f32.gmra.mrb[2].mxu0 %v90_v53  ;;  %v827_v53 = vld [vmem:[%s3875_s4 + $0x60] sm:$0xff] }
  0x71   :  { %2720 = vmatpush3.bf16.msra.mxu0 %v3373_v15  ;;  %2014 = vmatprep.mubr.f32.mxu0 %v91_v54  ;;  %v828_v54 = vld [vmem:[%s3875_s4 + $0x68] sm:$0xff] }
  0x72   :  { %2721 = vmatprep.subr.bf16.mxu0 %v3240_v0  ;;  %2744 = vmatpush3.bf16.msra.mxu1 %v3373_v15 }
  0x73   :  { %2745 = vmatprep.subr.bf16.mxu1 %v3240_v0 }
  0x74   :  { %2015 = vmatmul.mubr.f32.gmra.mrb[4].mxu0 %v92_v55  ;;  %v2907_v55 = vpack.c.bf16 %v828_v54, %v827_v53 }
  0x75   :  { %2723 = vmatpush3.bf16.msra.mxu0 %v3377_v21  ;;  %2017 = vmatprep.mubr.f32.mxu0 %v93_v56  ;;  %v829_v56 = vld [vmem:[%s3875_s4 + $0x70] sm:$0xff] }
  0x76   :  { %2724 = vmatprep.subr.bf16.mxu0 %v3240_v0  ;;  %2747 = vmatpush3.bf16.msra.mxu1 %v3377_v21 }
  0x77   :  { %2748 = vmatprep.subr.bf16.mxu1 %v3240_v0 }
  0x78   :  { %2018 = vmatmul.mubr.f32.gmra.mrb[6].mxu0 %v94_v57  ;;  %v830_v57 = vld [vmem:[%s3875_s4 + $0x78] sm:$0xff] }
  0x79   :  { %2726 = vmatpush3.bf16.msra.mxu0 %v3384_v28  ;;  %2087 = vmatprep.mubr.msk.f32.mxu0 %vm3241_vm0, %v3242_v1 }
  0x7a   :  { %2727 = vmatprep.subr.bf16.mxu0 %v3240_v0  ;;  %2750 = vmatpush3.bf16.msra.mxu1 %v3384_v28 }
  0x7b   :  { %2751 = vmatprep.subr.bf16.mxu1 %v3240_v0 }
  0x7d   :  { %2729 = vmatpush3.bf16.msra.mxu0 %v3388_v34 }
  0x7e   :  { %2730 = vmatprep.subr.bf16.mxu0 %v3240_v0  ;;  %2753 = vmatpush3.bf16.msra.mxu1 %v3388_v34 }
  0x7f   :  { %2754 = vmatprep.subr.bf16.mxu1 %v3240_v0 }
  0x81   :  { %2732 = vmatpush3.bf16.msra.mxu0 %v3392_v40 }
  0x82   :  { %2733 = vmatprep.subr.bf16.mxu0 %v3240_v0  ;;  %2756 = vmatpush3.bf16.msra.mxu1 %v3392_v40 }
  0x83   :  { %2757 = vmatprep.subr.bf16.mxu1 %v3240_v0 }
  0x85   :  { %2735 = vmatpush3.bf16.msra.mxu0 %v3396_v46 }
  0x86   :  { %2736 = vmatprep.subr.bf16.mxu0 %v3240_v0  ;;  %2759 = vmatpush3.bf16.msra.mxu1 %v3396_v46 }
  0x87   :  { %2760 = vmatprep.subr.bf16.mxu1 %v3240_v0 }
  0x89   :  { %2738 = vmatpush3.bf16.msra.mxu0 %v3400_v50 }
  0x8a   :  { %2762 = vmatpush3.bf16.msra.mxu1 %v3400_v50  ;;  %2763 = vmatprep.subr.bf16.mxu0 %v3240_v0 }
  0x8b   :  { %2787 = vmatprep.subr.bf16.mxu1 %v3240_v0 }
 0x13f   :  { %v2010_v59 = vpop.f32.mrb[0].mxu0  ;;  %v305_v60 = vpop.f32.mrb[0].mxu1 }
 0x140   :  { %v200_v61 = vpop.f32.mrb[1].mxu0  ;;  %v2054_v62 = vpop.f32.mrb[1].mxu1  ;;  %v206_v11 = vadd.f32 %v2010_v59, %v3467_v58  ;;  %v2911_v59 = vpack.c.bf16 %v830_v57, %v829_v56 }
 0x141   :  { %v201_v63 = vadd.f32 %v3467_v58, %v200_v61  ;;  %v832_v61 = vld [vmem:[#allocation6 + $0x8] sm:$0xff] }
 0x143   :  { %v3470_v2 = vadd.f32 %v305_v60, %v201_v63  ;;  %v3472_v3 = vpop.f32.mrb[2].mxu0  ;;  %v831_v60 = vld [vmem:[#allocation6] sm:$0xff]  ;;  %v833_v63 = vld [vmem:[#allocation6 + $0x10] sm:$0xff] }
 0x144   :  { %v210_v4 = vpop.f32.mrb[3].mxu0  ;;  %v216_v23 = vadd.f32 %v3472_v3, %v3467_v58  ;;  %v3661_v62 = vpack.c.bf16 %v832_v61, %v831_v60 }
 0x145   :  { %v310_v5 = vmax.f32 %v3470_v2, 0.0  ;;  %v211_v17 = vadd.f32 %v3467_v58, %v210_v4  ;;  %v834_v2 = vld [vmem:[#allocation6 + $0x18] sm:$0xff]  ;;  %v835_v4 = vld [vmem:[#allocation6 + $0x20] sm:$0xff] }
 0x146   :  { %v3665_v3 = vpack.c.bf16 %v834_v2, %v833_v63 }
 0x147   :  { %2088 = vmatmul.mubr.f32.vlgmr.msra.gmra.mrb[8].mxu0 %v310_v5  ;;  %v3477_v6 = vpop.f32.mrb[4].mxu0 }
 0x148   :  { %v3479_v7 = vpop.f32.mrb[5].mxu0  ;;  %2765 = vmatpush3.bf16.msra.mxu0 %v3370_v9  ;;  %2157 = vmatprep.mubr.msk.f32.mxu0 %vm3241_vm0, %v3242_v1 }
 0x149   :  { %2766 = vmatprep.subr.bf16.mxu0 %v3240_v0  ;;  %v221_v29 = vadd.f32 %v3467_v58, %v3479_v7  ;;  %v837_v7 = vld [vmem:[#allocation6 + $0x30] sm:$0xff] }
 0x14b   :  { %v3499_v8 = vpop.f32.mrb[6].mxu0 }
 0x14c   :  { %2768 = vmatpush3.bf16.msra.mxu0 %v3373_v15  ;;  %v3501_v10 = vpop.f32.mrb[7].mxu0 }
 0x14d   :  { %2769 = vmatprep.subr.bf16.mxu0 %v3240_v0 }
 0x150   :  { %2771 = vmatpush3.bf16.msra.mxu0 %v3377_v21 }
 0x151   :  { %2772 = vmatprep.subr.bf16.mxu0 %v3240_v0 }
 0x154   :  { %2774 = vmatpush3.bf16.msra.mxu0 %v3384_v28 }
 0x155   :  { %2775 = vmatprep.subr.bf16.mxu0 %v3240_v0 }
 0x158   :  { %2777 = vmatpush3.bf16.msra.mxu0 %v3388_v34 }
 0x159   :  { %2778 = vmatprep.subr.bf16.mxu0 %v3240_v0 }
 0x15c   :  { %2780 = vmatpush3.bf16.msra.mxu0 %v3392_v40 }
 0x15d   :  { %2781 = vmatprep.subr.bf16.mxu0 %v3240_v0 }
 0x160   :  { %2783 = vmatpush3.bf16.msra.mxu0 %v3396_v46 }
 0x161   :  { %2784 = vmatprep.subr.bf16.mxu0 %v3240_v0 }
 0x164   :  { %2786 = vmatpush3.bf16.msra.mxu0 %v3400_v50 }
 0x165   :  { %2811 = vmatprep.subr.bf16.mxu0 %v3240_v0 }
 0x21a   :  { %v377_v12 = vpop.f32.mrb[8].mxu0 }
 0x21b   :  { %v3504_v13 = vadd.f32 %v377_v12, %v206_v11  ;;  %v2089_v14 = vpop.f32.mrb[9].mxu0  ;;  %v838_v11 = vld [vmem:[#allocation6 + $0x38] sm:$0xff] }
 0x21c   :  { %v3673_v12 = vpack.c.bf16 %v838_v11, %v837_v7  ;;  %v840_v14 = vld [vmem:[#allocation6 + $0x48] sm:$0xff] }
 0x21d   :  { %v382_v16 = vmax.f32 %v3504_v13, 0.0  ;;  %v839_v13 = vld [vmem:[#allocation6 + $0x40] sm:$0xff] }
 0x21f   :  { %2123 = vmatmul.mubr.f32.vlgmr.msra.gmra.mrb[2].mxu1 %v382_v16 }
 0x220   :  { %2789 = vmatpush3.bf16.msra.mxu1 %v3370_v9  ;;  %2192 = vmatprep.mubr.msk.f32.mxu1 %vm3241_vm0, %v3242_v1 }
 0x221   :  { %2790 = vmatprep.subr.bf16.mxu1 %v3240_v0 }
 0x224   :  { %2792 = vmatpush3.bf16.msra.mxu1 %v3373_v15 }
 0x225   :  { %2793 = vmatprep.subr.bf16.mxu1 %v3240_v0 }
 0x228   :  { %2795 = vmatpush3.bf16.msra.mxu1 %v3377_v21 }
 0x229   :  { %2796 = vmatprep.subr.bf16.mxu1 %v3240_v0 }
 0x22c   :  { %2798 = vmatpush3.bf16.msra.mxu1 %v3384_v28 }
 0x22d   :  { %2799 = vmatprep.subr.bf16.mxu1 %v3240_v0 }
 0x230   :  { %2801 = vmatpush3.bf16.msra.mxu1 %v3388_v34 }
 0x231   :  { %2802 = vmatprep.subr.bf16.mxu1 %v3240_v0 }
 0x234   :  { %2804 = vmatpush3.bf16.msra.mxu1 %v3392_v40 }
 0x235   :  { %2805 = vmatprep.subr.bf16.mxu1 %v3240_v0 }
 0x238   :  { %2807 = vmatpush3.bf16.msra.mxu1 %v3396_v46 }
 0x239   :  { %2808 = vmatprep.subr.bf16.mxu1 %v3240_v0 }
 0x23c   :  { %2810 = vmatpush3.bf16.msra.mxu1 %v3400_v50 }
 0x23d   :  { %2835 = vmatprep.subr.bf16.mxu1 %v3240_v0 }
 0x2f2   :  { %v449_v18 = vpop.f32.mrb[2].mxu1 }
 0x2f3   :  { %v3528_v19 = vadd.f32 %v449_v18, %v211_v17  ;;  %v2124_v20 = vpop.f32.mrb[3].mxu1  ;;  %v841_v17 = vld [vmem:[#allocation6 + $0x50] sm:$0xff]  ;;  %v842_v18 = vld [vmem:[#allocation6 + $0x58] sm:$0xff] }
 0x2f4   :  { %v843_v20 = vld [vmem:[#allocation6 + $0x60] sm:$0xff] }
 0x2f5   :  { %v454_v22 = vmax.f32 %v3528_v19, 0.0  ;;  %v3681_v19 = vpack.c.bf16 %v842_v18, %v841_v17  ;;  %v1538_v17 = vld [vmem:[#allocation7 + $0x18] sm:$0xff] }
 0x2f7   :  { %2158 = vmatmul.mubr.f32.vlgmr.msra.gmra.mrb[10].mxu0 %v454_v22 }
 0x2f8   :  { %2813 = vmatpush3.bf16.msra.mxu0 %v3370_v9  ;;  %2227 = vmatprep.mubr.msk.f32.mxu0 %vm3241_vm0, %v3242_v1 }
 0x2f9   :  { %2814 = vmatprep.subr.bf16.mxu0 %v3240_v0 }
 0x2fc   :  { %2816 = vmatpush3.bf16.msra.mxu0 %v3373_v15 }
 0x2fd   :  { %2817 = vmatprep.subr.bf16.mxu0 %v3240_v0 }
 0x300   :  { %2819 = vmatpush3.bf16.msra.mxu0 %v3377_v21 }
 0x301   :  { %2820 = vmatprep.subr.bf16.mxu0 %v3240_v0 }
 0x304   :  { %2822 = vmatpush3.bf16.msra.mxu0 %v3384_v28 }
 0x305   :  { %2823 = vmatprep.subr.bf16.mxu0 %v3240_v0 }
 0x308   :  { %2825 = vmatpush3.bf16.msra.mxu0 %v3388_v34 }
 0x309   :  { %2826 = vmatprep.subr.bf16.mxu0 %v3240_v0 }
 0x30c   :  { %2828 = vmatpush3.bf16.msra.mxu0 %v3392_v40 }
 0x30d   :  { %2829 = vmatprep.subr.bf16.mxu0 %v3240_v0 }
 0x310   :  { %2831 = vmatpush3.bf16.msra.mxu0 %v3396_v46 }
 0x311   :  { %2832 = vmatprep.subr.bf16.mxu0 %v3240_v0 }
 0x314   :  { %2834 = vmatpush3.bf16.msra.mxu0 %v3400_v50 }
 0x315   :  { %2859 = vmatprep.subr.bf16.mxu0 %v3240_v0 }
 0x3ca   :  { %v521_v24 = vpop.f32.mrb[10].mxu0 }
 0x3cb   :  { %v3553_v25 = vadd.f32 %v521_v24, %v216_v23  ;;  %v2159_v26 = vpop.f32.mrb[11].mxu0  ;;  %v845_v24 = vld [vmem:[#allocation6 + $0x70] sm:$0xff] }
 0x3cd   :  { %v526_v27 = vmax.f32 %v3553_v25, 0.0  ;;  %v846_v25 = vld [vmem:[#allocation6 + $0x78] sm:$0xff] }
 0x3ce   :  { %v3689_v26 = vpack.c.bf16 %v846_v25, %v845_v24  ;;  %v1542_v24 = vld [vmem:[#allocation7 + $0x38] sm:$0xff] }
 0x3cf   :  { %2193 = vmatmul.mubr.f32.vlgmr.msra.gmra.mrb[4].mxu1 %v526_v27 }
 0x3d0   :  { %2837 = vmatpush3.bf16.msra.mxu1 %v3370_v9  ;;  %2262 = vmatprep.mubr.msk.f32.mxu1 %vm3241_vm0, %v3242_v1 }
 0x3d1   :  { %2838 = vmatprep.subr.bf16.mxu1 %v3240_v0 }
 0x3d4   :  { %2840 = vmatpush3.bf16.msra.mxu1 %v3373_v15 }
 0x3d5   :  { %2841 = vmatprep.subr.bf16.mxu1 %v3240_v0 }
 0x3d8   :  { %2843 = vmatpush3.bf16.msra.mxu1 %v3377_v21 }
 0x3d9   :  { %2844 = vmatprep.subr.bf16.mxu1 %v3240_v0 }
 0x3dc   :  { %2846 = vmatpush3.bf16.msra.mxu1 %v3384_v28 }
 0x3dd   :  { %2847 = vmatprep.subr.bf16.mxu1 %v3240_v0 }
 0x3e0   :  { %2849 = vmatpush3.bf16.msra.mxu1 %v3388_v34 }
 0x3e1   :  { %2850 = vmatprep.subr.bf16.mxu1 %v3240_v0 }
 0x3e4   :  { %2852 = vmatpush3.bf16.msra.mxu1 %v3392_v40 }
 0x3e5   :  { %2853 = vmatprep.subr.bf16.mxu1 %v3240_v0 }
 0x3e8   :  { %2855 = vmatpush3.bf16.msra.mxu1 %v3396_v46 }
 0x3e9   :  { %2856 = vmatprep.subr.bf16.mxu1 %v3240_v0 }
 0x3ec   :  { %2858 = vmatpush3.bf16.msra.mxu1 %v3400_v50 }
 0x4a2   :  { %v593_v30 = vpop.f32.mrb[4].mxu1 }
 0x4a3   :  { %v3577_v31 = vadd.f32 %v593_v30, %v221_v29  ;;  %v2194_v32 = vpop.f32.mrb[5].mxu1 }
 0x4a5   :  { %v598_v33 = vmax.f32 %v3577_v31, 0.0 }
 0x4a7   :  { %2228 = vmatmul.mubr.f32.vlgmr.msra.gmra.mrb[12].mxu0 %v598_v33 }
 0x4a8   :  { %2861 = vmatpush3.bf16.msra.mxu0 %v3370_v9  ;;  %2297 = vmatprep.mubr.msk.f32.mxu0 %vm3241_vm0, %v3242_v1  ;;  %v815_v9 = vld [vmem:[%s3875_s4] sm:$0xff] }
 0x4a9   :  { %2862 = vmatprep.subr.bf16.mxu0 %v3240_v0 }
 0x4ac   :  { %2864 = vmatpush3.bf16.msra.mxu0 %v3373_v15  ;;  %v816_v15 = vld [vmem:[%s3875_s4 + $0x8] sm:$0xff] }
 0x4ad   :  { %2865 = vmatprep.subr.bf16.mxu0 %v3240_v0 }
 0x4b0   :  { %2867 = vmatpush3.bf16.msra.mxu0 %v3377_v21  ;;  %v2883_v21 = vpack.c.bf16 %v816_v15, %v815_v9 }
 0x4b1   :  { %2868 = vmatprep.subr.bf16.mxu0 %v3240_v0 }
 0x4b2   :  { %2884 = vmatprep.subr.bf16.mxu1 %v2883_v21 }
 0x4b4   :  { %2870 = vmatpush3.bf16.msra.mxu0 %v3384_v28  ;;  %v226_v28 = vadd.f32 %v3477_v6, %v3467_v58 }
 0x4b5   :  { %2871 = vmatprep.subr.bf16.mxu0 %v3240_v0 }
 0x4b8   :  { %2873 = vmatpush3.bf16.msra.mxu0 %v3388_v34 }
 0x4b9   :  { %2874 = vmatprep.subr.bf16.mxu0 %v3240_v0 }
 0x4bc   :  { %2876 = vmatpush3.bf16.msra.mxu0 %v3392_v40  ;;  %v2887_v40 = vpack.c.bf16 %v818_v36, %v817_v35 }
 0x4bd   :  { %2877 = vmatprep.subr.bf16.mxu0 %v3240_v0 }
 0x4c0   :  { %2879 = vmatpush3.bf16.msra.mxu0 %v3396_v46  ;;  %v2895_v46 = vpack.c.bf16 %v822_v45, %v821_v44 }
 0x4c1   :  { %2880 = vmatprep.subr.bf16.mxu0 %v3240_v0 }
 0x4c4   :  { %2882 = vmatpush3.bf16.msra.mxu0 %v3400_v50  ;;  %v825_v50 = vld [vmem:[%s3875_s4 + $0x50] sm:$0xff] }
 0x4c5   :  { %2915 = vmatprep.subr.bf16.mxu0 %v3240_v0  ;;  %v2903_v52 = vpack.c.bf16 %v826_v51, %v825_v50 }
 0x57a   :  { %v665_v34 = vpop.f32.mrb[12].mxu0 }
 0x57b   :  { %v669_v37 = vadd.f32 %v665_v34, %v226_v28  ;;  %v2229_v38 = vpop.f32.mrb[13].mxu0  ;;  %v236_v34 = vadd.f32 %v3499_v8, %v3467_v58 }
 0x57d   :  { %v670_v39 = vmax.f32 %v669_v37, 0.0 }
 0x57f   :  { %2263 = vmatmul.mubr.f32.vlgmr.msra.gmra.mrb[6].mxu1 %v670_v39 }
 0x580   :  { %2886 = vmatpush3.bf16.msra.mxu1 %v2883_v21  ;;  %2332 = vmatprep.mubr.f32.mxu1 %v310_v5  ;;  %v836_v5 = vld [vmem:[#allocation6 + $0x28] sm:$0xff] }
 0x581   :  { %2888 = vmatprep.subr.bf16.mxu1 %v2887_v40  ;;  %v3669_v6 = vpack.c.bf16 %v836_v5, %v835_v4 }
 0x584   :  { %2890 = vmatpush3.bf16.msra.mxu1 %v2887_v40 }
 0x585   :  { %2892 = vmatprep.subr.bf16.mxu1 %v2891_v43 }
 0x588   :  { %2894 = vmatpush3.bf16.msra.mxu1 %v2891_v43 }
 0x589   :  { %2896 = vmatprep.subr.bf16.mxu1 %v2895_v46 }
 0x58c   :  { %2898 = vmatpush3.bf16.msra.mxu1 %v2895_v46 }
 0x58d   :  { %2900 = vmatprep.subr.bf16.mxu1 %v2899_v49 }
 0x590   :  { %2902 = vmatpush3.bf16.msra.mxu1 %v2899_v49 }
 0x591   :  { %2904 = vmatprep.subr.bf16.mxu1 %v2903_v52 }
 0x594   :  { %2906 = vmatpush3.bf16.msra.mxu1 %v2903_v52 }
 0x595   :  { %2908 = vmatprep.subr.bf16.mxu1 %v2907_v55 }
 0x598   :  { %2910 = vmatpush3.bf16.msra.mxu1 %v2907_v55 }
 0x599   :  { %2912 = vmatprep.subr.bf16.mxu1 %v2911_v59 }
 0x59c   :  { %2914 = vmatpush3.bf16.msra.mxu1 %v2911_v59 }
 0x59d   :  { %2939 = vmatprep.subr.bf16.mxu1 %v3240_v0 }
 0x59f   :  { %2333 = vmatmul.mubr.f32.vlgmr.msra.gmra.mrb[8].mxu1 %v382_v16  ;;  %v3677_v16 = vpack.c.bf16 %v840_v14, %v839_v13  ;;  %v1536_v13 = vld [vmem:[#allocation7 + $0x8] sm:$0xff]  ;;  %v1537_v14 = vld [vmem:[#allocation7 + $0x10] sm:$0xff] }
 0x5a0   :  { %2335 = vmatprep.mubr.f32.mxu1 %v454_v22  ;;  %2941 = vmatpush3.bf16.msra.mxu1 %v3661_v62  ;;  %v844_v22 = vld [vmem:[#allocation6 + $0x68] sm:$0xff]  ;;  %v3111_v18 = vpack.c.bf16 %v1538_v17, %v1537_v14 }
 0x5a1   :  { %2942 = vmatprep.subr.bf16.mxu1 %v3240_v0  ;;  %v3685_v23 = vpack.c.bf16 %v844_v22, %v843_v20  ;;  %v1540_v20 = vld [vmem:[#allocation7 + $0x28] sm:$0xff] }
 0x5a3   :  { %2336 = vmatmul.mubr.f32.gmra.mrb[10].mxu1 %v526_v27  ;;  %v231_v27 = vadd.f32 %v3467_v58, %v3501_v10 }
 0x5a4   :  { %2338 = vmatprep.mubr.f32.mxu1 %v598_v33  ;;  %2944 = vmatpush3.bf16.msra.mxu1 %v3665_v3 }
 0x5a5   :  { %2945 = vmatprep.subr.bf16.mxu1 %v3240_v0 }
 0x5a7   :  { %2339 = vmatmul.mubr.f32.gmra.mrb[12].mxu1 %v670_v39  ;;  %v3747_v39 = vld [vmem:[%s3877_s6] ss:$0 sm:$0xff] }
 0x5a8   :  { %2947 = vmatpush3.bf16.msra.mxu1 %v3669_v6 }
 0x5a9   :  { %2948 = vmatprep.subr.bf16.mxu1 %v3240_v0 }
 0x5ac   :  { %2950 = vmatpush3.bf16.msra.mxu1 %v3673_v12 }
 0x5ad   :  { %2951 = vmatprep.subr.bf16.mxu1 %v3240_v0 }
 0x5b0   :  { %2953 = vmatpush3.bf16.msra.mxu1 %v3677_v16 }
 0x5b1   :  { %2954 = vmatprep.subr.bf16.mxu1 %v3240_v0 }
 0x5b4   :  { %2956 = vmatpush3.bf16.msra.mxu1 %v3681_v19 }
 0x5b5   :  { %2957 = vmatprep.subr.bf16.mxu1 %v3240_v0 }
 0x5b8   :  { %2959 = vmatpush3.bf16.msra.mxu1 %v3685_v23 }
 0x5b9   :  { %2960 = vmatprep.subr.bf16.mxu1 %v3240_v0 }
 0x5bc   :  { %2962 = vmatpush3.bf16.msra.mxu1 %v3689_v26 }
 0x5bd   :  { %2987 = vmatprep.subr.bf16.mxu1 %v3240_v0 }
 0x652   :  { %v737_v29 = vpop.f32.mrb[6].mxu1 }
 0x653   :  { %v741_v30 = vadd.f32 %v737_v29, %v231_v27  ;;  %v2264_v31 = vpop.f32.mrb[7].mxu1  ;;  %v1545_v29 = vld [vmem:[#allocation7 + $0x50] sm:$0xff] }
 0x655   :  { %v742_v32 = vmax.f32 %v741_v30, 0.0  ;;  %v1546_v30 = vld [vmem:[#allocation7 + $0x58] sm:$0xff] }
 0x656   :  { %v3123_v31 = vpack.c.bf16 %v1546_v30, %v1545_v29 }
 0x657   :  { %2298 = vmatmul.mubr.f32.vlgmr.msra.gmra.mrb[14].mxu0 %v742_v32  ;;  %2341 = vmatprep.mubr.f32.mxu1 %v742_v32  ;;  %v1547_v32 = vld [vmem:[#allocation7 + $0x60] sm:$0xff] }
 0x658   :  { %2917 = vmatpush3.bf16.msra.mxu0 %v3661_v62  ;;  %2376 = vmatprep.mubr.msk.f32.mxu0 %vm3241_vm0, %v3242_v1 }
 0x659   :  { %2918 = vmatprep.subr.bf16.mxu0 %v3240_v0 }
 0x65c   :  { %2920 = vmatpush3.bf16.msra.mxu0 %v3665_v3 }
 0x65d   :  { %2921 = vmatprep.subr.bf16.mxu0 %v3240_v0 }
 0x660   :  { %2923 = vmatpush3.bf16.msra.mxu0 %v3669_v6 }
 0x661   :  { %2924 = vmatprep.subr.bf16.mxu0 %v3240_v0 }
 0x664   :  { %2926 = vmatpush3.bf16.msra.mxu0 %v3673_v12 }
 0x665   :  { %2927 = vmatprep.subr.bf16.mxu0 %v3240_v0 }
 0x668   :  { %2929 = vmatpush3.bf16.msra.mxu0 %v3677_v16 }
 0x669   :  { %2930 = vmatprep.subr.bf16.mxu0 %v3240_v0 }
 0x66c   :  { %2932 = vmatpush3.bf16.msra.mxu0 %v3681_v19 }
 0x66d   :  { %2933 = vmatprep.subr.bf16.mxu0 %v3240_v0 }
 0x670   :  { %2935 = vmatpush3.bf16.msra.mxu0 %v3685_v23 }
 0x671   :  { %2936 = vmatprep.subr.bf16.mxu0 %v3240_v0 }
 0x672   :  { %v2334_v10 = vpop.f32.mrb[8].mxu1 }
 0x673   :  { %v920_v33 = vpop.f32.mrb[9].mxu1  ;;  %v926_v45 = vadd.f32 %v2334_v10, %v3747_v39  ;;  %v1548_v10 = vld [vmem:[#allocation7 + $0x68] sm:$0xff] }
 0x674   :  { %2938 = vmatpush3.bf16.msra.mxu0 %v3689_v26  ;;  %v921_v40 = vadd.f32 %v3747_v39, %v920_v33  ;;  %v3126_v33 = vpack.c.bf16 %v1548_v10, %v1547_v32 }
 0x675   :  { %2963 = vmatprep.subr.bf16.mxu0 %v3240_v0 }
 0x676   :  { %v3713_v9 = vpop.f32.mrb[10].mxu1 }
 0x677   :  { %v3715_v15 = vpop.f32.mrb[11].mxu1  ;;  %2377 = vmatmul.mubr.f32.vlgmr.msra.gmra.mrb[16].mxu0 %v3242_v1  ;;  %v936_v55 = vadd.f32 %v3713_v9, %v3747_v39 }
 0x678   :  { %2965 = vmatpush3.bf16.msra.mxu0 %v3661_v62  ;;  %2446 = vmatprep.mubr.msk.f32.mxu0 %vm3241_vm0, %v3242_v1  ;;  %v931_v50 = vadd.f32 %v3747_v39, %v3715_v15 }
 0x679   :  { %2966 = vmatprep.subr.bf16.mxu0 %v3240_v0 }
 0x67a   :  { %v3722_v21 = vpop.f32.mrb[12].mxu1 }
 0x67b   :  { %v3724_v28 = vpop.f32.mrb[13].mxu1 }
 0x67c   :  { %2968 = vmatpush3.bf16.msra.mxu0 %v3665_v3  ;;  %v941_v61 = vadd.f32 %v3747_v39, %v3724_v28 }
 0x67d   :  { %2969 = vmatprep.subr.bf16.mxu0 %v3240_v0 }
 0x680   :  { %2971 = vmatpush3.bf16.msra.mxu0 %v3669_v6 }
 0x681   :  { %2972 = vmatprep.subr.bf16.mxu0 %v3240_v0 }
 0x684   :  { %2974 = vmatpush3.bf16.msra.mxu0 %v3673_v12 }
 0x685   :  { %2975 = vmatprep.subr.bf16.mxu0 %v3240_v0 }
 0x688   :  { %2977 = vmatpush3.bf16.msra.mxu0 %v3677_v16 }
 0x689   :  { %2978 = vmatprep.subr.bf16.mxu0 %v3240_v0 }
 0x68c   :  { %2980 = vmatpush3.bf16.msra.mxu0 %v3681_v19 }
 0x68d   :  { %2981 = vmatprep.subr.bf16.mxu0 %v3240_v0 }
 0x690   :  { %2983 = vmatpush3.bf16.msra.mxu0 %v3685_v23 }
 0x691   :  { %2984 = vmatprep.subr.bf16.mxu0 %v3240_v0 }
 0x694   :  { %2986 = vmatpush3.bf16.msra.mxu0 %v3689_v26 }
 0x695   :  { %3011 = vmatprep.subr.bf16.mxu0 %v3240_v0 }
 0x72a   :  { %v809_v35 = vpop.f32.mrb[14].mxu0 }
 0x72b   :  { %v813_v36 = vadd.f32 %v809_v35, %v236_v34  ;;  %v2299_v37 = vpop.f32.mrb[15].mxu0  ;;  %v1549_v35 = vld [vmem:[#allocation7 + $0x70] sm:$0xff] }
 0x72d   :  { %v814_v38 = vmax.f32 %v813_v36, 0.0  ;;  %v1550_v36 = vld [vmem:[#allocation7 + $0x78] sm:$0xff] }
 0x72e   :  { %v3129_v37 = vpack.c.bf16 %v1550_v36, %v1549_v35 }
 0x72f   :  { %2342 = vmatmul.mubr.f32.gmra.mrb[14].mxu1 %v814_v38 }
 0x730   :  { %2411 = vmatprep.mubr.msk.f32.mxu1 %vm3241_vm0, %v3242_v1 }
 0x74a   :  { %v1025_v41 = vpop.f32.mrb[16].mxu0 }
 0x74b   :  { %v1029_v42 = vadd.f32 %v1025_v41, %v921_v40  ;;  %v2378_v43 = vpop.f32.mrb[17].mxu0 }
 0x74d   :  { %v1030_v44 = vmax.f32 %v1029_v42, 0.0 }
 0x74f   :  { %2412 = vmatmul.mubr.f32.vlgmr.msra.gmra.mrb[16].mxu1 %v1030_v44 }
 0x750   :  { %2989 = vmatpush3.bf16.msra.mxu1 %v3661_v62  ;;  %2481 = vmatprep.mubr.msk.f32.mxu1 %vm3241_vm0, %v3242_v1 }
 0x751   :  { %2990 = vmatprep.subr.bf16.mxu1 %v3240_v0 }
 0x754   :  { %2992 = vmatpush3.bf16.msra.mxu1 %v3665_v3 }
 0x755   :  { %2993 = vmatprep.subr.bf16.mxu1 %v3240_v0 }
 0x758   :  { %2995 = vmatpush3.bf16.msra.mxu1 %v3669_v6 }
 0x759   :  { %2996 = vmatprep.subr.bf16.mxu1 %v3240_v0 }
 0x75c   :  { %2998 = vmatpush3.bf16.msra.mxu1 %v3673_v12 }
 0x75d   :  { %2999 = vmatprep.subr.bf16.mxu1 %v3240_v0 }
 0x760   :  { %3001 = vmatpush3.bf16.msra.mxu1 %v3677_v16 }
 0x761   :  { %3002 = vmatprep.subr.bf16.mxu1 %v3240_v0 }
 0x764   :  { %3004 = vmatpush3.bf16.msra.mxu1 %v3681_v19 }
 0x765   :  { %3005 = vmatprep.subr.bf16.mxu1 %v3240_v0 }
 0x768   :  { %3007 = vmatpush3.bf16.msra.mxu1 %v3685_v23 }
 0x769   :  { %3008 = vmatprep.subr.bf16.mxu1 %v3240_v0 }
 0x76c   :  { %3010 = vmatpush3.bf16.msra.mxu1 %v3689_v26 }
 0x76d   :  { %3035 = vmatprep.subr.bf16.mxu1 %v3240_v0 }
 0x802   :  { %v3768_v58 = vpop.f32.mrb[14].mxu1 }
 0x803   :  { %v3770_v8 = vpop.f32.mrb[15].mxu1  ;;  %v956_v38 = vadd.f32 %v3768_v58, %v3747_v39 }
 0x804   :  { %v951_v9 = vadd.f32 %v3747_v39, %v3770_v8 }
 0x822   :  { %v1097_v46 = vpop.f32.mrb[16].mxu1 }
 0x823   :  { %v1101_v47 = vadd.f32 %v1097_v46, %v926_v45  ;;  %v2413_v48 = vpop.f32.mrb[17].mxu1 }
 0x825   :  { %v1102_v49 = vmax.f32 %v1101_v47, 0.0 }
 0x827   :  { %2447 = vmatmul.mubr.f32.vlgmr.msra.gmra.mrb[18].mxu0 %v1102_v49 }
 0x828   :  { %3013 = vmatpush3.bf16.msra.mxu0 %v3661_v62  ;;  %2516 = vmatprep.mubr.msk.f32.mxu0 %vm3241_vm0, %v3242_v1 }
 0x829   :  { %3014 = vmatprep.subr.bf16.mxu0 %v3240_v0 }
 0x82c   :  { %3016 = vmatpush3.bf16.msra.mxu0 %v3665_v3 }
 0x82d   :  { %3017 = vmatprep.subr.bf16.mxu0 %v3240_v0 }
 0x830   :  { %3019 = vmatpush3.bf16.msra.mxu0 %v3669_v6 }
 0x831   :  { %3020 = vmatprep.subr.bf16.mxu0 %v3240_v0 }
 0x834   :  { %3022 = vmatpush3.bf16.msra.mxu0 %v3673_v12 }
 0x835   :  { %3023 = vmatprep.subr.bf16.mxu0 %v3240_v0 }
 0x838   :  { %3025 = vmatpush3.bf16.msra.mxu0 %v3677_v16 }
 0x839   :  { %3026 = vmatprep.subr.bf16.mxu0 %v3240_v0 }
 0x83c   :  { %3028 = vmatpush3.bf16.msra.mxu0 %v3681_v19 }
 0x83d   :  { %3029 = vmatprep.subr.bf16.mxu0 %v3240_v0 }
 0x840   :  { %3031 = vmatpush3.bf16.msra.mxu0 %v3685_v23 }
 0x841   :  { %3032 = vmatprep.subr.bf16.mxu0 %v3240_v0 }
 0x844   :  { %3034 = vmatpush3.bf16.msra.mxu0 %v3689_v26 }
 0x845   :  { %3059 = vmatprep.subr.bf16.mxu0 %v3240_v0 }
 0x8fa   :  { %v1169_v51 = vpop.f32.mrb[18].mxu0 }
 0x8fb   :  { %v1173_v52 = vadd.f32 %v1169_v51, %v931_v50  ;;  %v2448_v53 = vpop.f32.mrb[19].mxu0 }
 0x8fd   :  { %v1174_v54 = vmax.f32 %v1173_v52, 0.0 }
 0x8ff   :  { %2482 = vmatmul.mubr.f32.vlgmr.msra.gmra.mrb[18].mxu1 %v1174_v54 }
 0x900   :  { %3037 = vmatpush3.bf16.msra.mxu1 %v3661_v62  ;;  %2551 = vmatprep.mubr.msk.f32.mxu1 %vm3241_vm0, %v3242_v1 }
 0x901   :  { %3038 = vmatprep.subr.bf16.mxu1 %v3240_v0 }
 0x904   :  { %3040 = vmatpush3.bf16.msra.mxu1 %v3665_v3 }
 0x905   :  { %3041 = vmatprep.subr.bf16.mxu1 %v3240_v0 }
 0x908   :  { %3043 = vmatpush3.bf16.msra.mxu1 %v3669_v6 }
 0x909   :  { %3044 = vmatprep.subr.bf16.mxu1 %v3240_v0 }
 0x90c   :  { %3046 = vmatpush3.bf16.msra.mxu1 %v3673_v12 }
 0x90d   :  { %3047 = vmatprep.subr.bf16.mxu1 %v3240_v0 }
 0x910   :  { %3049 = vmatpush3.bf16.msra.mxu1 %v3677_v16 }
 0x911   :  { %3050 = vmatprep.subr.bf16.mxu1 %v3240_v0 }
 0x914   :  { %3052 = vmatpush3.bf16.msra.mxu1 %v3681_v19 }
 0x915   :  { %3053 = vmatprep.subr.bf16.mxu1 %v3240_v0 }
 0x918   :  { %3055 = vmatpush3.bf16.msra.mxu1 %v3685_v23 }
 0x919   :  { %3056 = vmatprep.subr.bf16.mxu1 %v3240_v0 }
 0x91c   :  { %3058 = vmatpush3.bf16.msra.mxu1 %v3689_v26 }
 0x91d   :  { %3083 = vmatprep.subr.bf16.mxu1 %v3240_v0 }
 0x9d2   :  { %v1241_v56 = vpop.f32.mrb[18].mxu1 }
 0x9d3   :  { %v1245_v57 = vadd.f32 %v1241_v56, %v936_v55  ;;  %v2483_v59 = vpop.f32.mrb[19].mxu1 }
 0x9d5   :  { %v1246_v60 = vmax.f32 %v1245_v57, 0.0 }
 0x9d7   :  { %2517 = vmatmul.mubr.f32.vlgmr.msra.gmra.mrb[20].mxu0 %v1246_v60 }
 0x9d8   :  { %3061 = vmatpush3.bf16.msra.mxu0 %v3661_v62  ;;  %2586 = vmatprep.mubr.msk.f32.mxu0 %vm3241_vm0, %v3242_v1 }
 0x9d9   :  { %3062 = vmatprep.subr.bf16.mxu0 %v3240_v0 }
 0x9dc   :  { %3064 = vmatpush3.bf16.msra.mxu0 %v3665_v3 }
 0x9dd   :  { %3065 = vmatprep.subr.bf16.mxu0 %v3240_v0 }
 0x9e0   :  { %3067 = vmatpush3.bf16.msra.mxu0 %v3669_v6 }
 0x9e1   :  { %3068 = vmatprep.subr.bf16.mxu0 %v3240_v0 }
 0x9e4   :  { %3070 = vmatpush3.bf16.msra.mxu0 %v3673_v12 }
 0x9e5   :  { %3071 = vmatprep.subr.bf16.mxu0 %v3240_v0 }
 0x9e8   :  { %3073 = vmatpush3.bf16.msra.mxu0 %v3677_v16 }
 0x9e9   :  { %3074 = vmatprep.subr.bf16.mxu0 %v3240_v0 }
 0x9ec   :  { %3076 = vmatpush3.bf16.msra.mxu0 %v3681_v19 }
 0x9ed   :  { %3077 = vmatprep.subr.bf16.mxu0 %v3240_v0 }
 0x9f0   :  { %3079 = vmatpush3.bf16.msra.mxu0 %v3685_v23 }
 0x9f1   :  { %3080 = vmatprep.subr.bf16.mxu0 %v3240_v0 }
 0x9f4   :  { %3082 = vmatpush3.bf16.msra.mxu0 %v3689_v26 }
 0x9f5   :  { %3107 = vmatprep.subr.bf16.mxu0 %v3240_v0 }
 0xaaa   :  { %v1313_v63 = vpop.f32.mrb[20].mxu0 }
 0xaab   :  { %v1317_v2 = vadd.f32 %v1313_v63, %v941_v61  ;;  %v2518_v4 = vpop.f32.mrb[21].mxu0 }
 0xaad   :  { %v1318_v5 = vmax.f32 %v1317_v2, 0.0 }
 0xaaf   :  { %2552 = vmatmul.mubr.f32.vlgmr.msra.gmra.mrb[20].mxu1 %v1318_v5 }
 0xab0   :  { %3085 = vmatpush3.bf16.msra.mxu1 %v3661_v62  ;;  %2621 = vmatprep.mubr.msk.f32.mxu1 %vm3241_vm0, %v3242_v1  ;;  %v946_v62 = vadd.f32 %v3722_v21, %v3747_v39 }
 0xab1   :  { %3086 = vmatprep.subr.bf16.mxu1 %v3240_v0 }
 0xab4   :  { %3088 = vmatpush3.bf16.msra.mxu1 %v3665_v3 }
 0xab5   :  { %3089 = vmatprep.subr.bf16.mxu1 %v3240_v0 }
 0xab8   :  { %3091 = vmatpush3.bf16.msra.mxu1 %v3669_v6 }
 0xab9   :  { %3092 = vmatprep.subr.bf16.mxu1 %v3240_v0 }
 0xabc   :  { %3094 = vmatpush3.bf16.msra.mxu1 %v3673_v12  ;;  %v1535_v12 = vld [vmem:[#allocation7] sm:$0xff] }
 0xabd   :  { %3095 = vmatprep.subr.bf16.mxu1 %v3240_v0 }
 0xac0   :  { %3097 = vmatpush3.bf16.msra.mxu1 %v3677_v16  ;;  %v3108_v16 = vpack.c.bf16 %v1536_v13, %v1535_v12 }
 0xac1   :  { %3098 = vmatprep.subr.bf16.mxu1 %v3240_v0 }
 0xac4   :  { %3100 = vmatpush3.bf16.msra.mxu1 %v3681_v19  ;;  %v1539_v19 = vld [vmem:[#allocation7 + $0x20] sm:$0xff] }
 0xac5   :  { %3101 = vmatprep.subr.bf16.mxu1 %v3240_v0  ;;  %v3114_v22 = vpack.c.bf16 %v1540_v20, %v1539_v19 }
 0xac8   :  { %3103 = vmatpush3.bf16.msra.mxu1 %v3685_v23  ;;  %v1541_v23 = vld [vmem:[#allocation7 + $0x30] sm:$0xff] }
 0xac9   :  { %3104 = vmatprep.subr.bf16.mxu1 %v3240_v0  ;;  %v3117_v25 = vpack.c.bf16 %v1542_v24, %v1541_v23 }
 0xacc   :  { %3106 = vmatpush3.bf16.msra.mxu1 %v3689_v26  ;;  %v1544_v26 = vld [vmem:[#allocation7 + $0x48] sm:$0xff] }
 0xb82   :  { %v1385_v3 = vpop.f32.mrb[20].mxu1 }
 0xb83   :  { %v1389_v6 = vadd.f32 %v1385_v3, %v946_v62  ;;  %v2553_v7 = vpop.f32.mrb[21].mxu1 }
 0xb85   :  { %v1390_v11 = vmax.f32 %v1389_v6, 0.0 }
 0xb87   :  { %2587 = vmatmul.mubr.f32.vlgmr.msra.gmra.mrb[22].mxu0 %v1390_v11 }
 0xb88   :  { %2656 = vmatprep.mubr.msk.f32.mxu0 %vm3241_vm0, %v3242_v1  ;;  %3109 = vmatpush3.bf16.msra.mxu0 %v3108_v16  ;;  %v1543_v1 = vld [vmem:[#allocation7 + $0x40] sm:$0xff] }
 0xb89   :  { %3110 = vmatprep.subr.bf16.mxu0 %v3240_v0  ;;  %v3120_v27 = vpack.c.bf16 %v1544_v26, %v1543_v1 }
 0xb8c   :  { %3112 = vmatpush3.bf16.msra.mxu0 %v3111_v18 }
 0xb8d   :  { %3113 = vmatprep.subr.bf16.mxu0 %v3240_v0 }
 0xb90   :  { %3115 = vmatpush3.bf16.msra.mxu0 %v3114_v22 }
 0xb91   :  { %3116 = vmatprep.subr.bf16.mxu0 %v3240_v0 }
 0xb94   :  { %3118 = vmatpush3.bf16.msra.mxu0 %v3117_v25 }
 0xb95   :  { %3119 = vmatprep.subr.bf16.mxu0 %v3240_v0 }
 0xb98   :  { %3121 = vmatpush3.bf16.msra.mxu0 %v3120_v27 }
 0xb99   :  { %3122 = vmatprep.subr.bf16.mxu0 %v3240_v0 }
 0xb9c   :  { %3124 = vmatpush3.bf16.msra.mxu0 %v3123_v31 }
 0xb9d   :  { %3125 = vmatprep.subr.bf16.mxu0 %v3240_v0 }
 0xba0   :  { %3127 = vmatpush3.bf16.msra.mxu0 %v3126_v33 }
 0xba1   :  { %3128 = vmatprep.subr.bf16.mxu0 %v3240_v0  ;;  %v1638_v0 = vld [vmem:[%s3879_s8] ss:$0 sm:$0xff] }
 0xba4   :  { %3130 = vmatpush3.bf16.msra.mxu0 %v3129_v37 }
 0xc5a   :  { %v1457_v15 = vpop.f32.mrb[22].mxu0 }
 0xc5b   :  { %v1461_v21 = vadd.f32 %v1457_v15, %v951_v9  ;;  %v2588_v28 = vpop.f32.mrb[23].mxu0 }
 0xc5d   :  { %v1462_v34 = vmax.f32 %v1461_v21, 0.0 }
 0xc5f   :  { %2622 = vmatmul.mubr.f32.vlgmr.msra.gmra.mrb[22].mxu1 %v1462_v34 }
 0xd32   :  { %v1529_v40 = vpop.f32.mrb[22].mxu1 }
 0xd33   :  { %v1533_v41 = vadd.f32 %v1529_v40, %v956_v38  ;;  %v2623_v42 = vpop.f32.mrb[23].mxu1 }
 0xd35   :  { %v1534_v43 = vmax.f32 %v1533_v41, 0.0 }
 0xd37   :  { %2657 = vmatmul.mubr.f32.vlgmr.msra.gmra.mrb[24].mxu0 %v1534_v43 }
 0xe0a   :  { %v1624_v44 = vpop.f32.mrb[24].mxu0 }
 0xe0b   :  { %v1625_v8 = vadd.f32 %v1638_v0, %v1624_v44  ;;  %v2658_v45 = vpop.f32.mrb[25].mxu0 }
 0xe0d   :  { %1628 = vst [vmem:[%s3880_s9] sm:$0xff] %v1625_v8 }
 0xe0e   :  { %1633 = vsyncpa [#allocation3], 1 }
 0xe0f   :  { %1634 = vsyncpa [#allocation5], 1 }
 0xe10   :  { %1635 = vsyncpa [#allocation8], 1 }

</bundles_post_ra>
